<compile_context>
chip_gen: v7x
topology: tpu7x:2x2x1
jax: 0.10.0
libtpu: 0.0.40
codegen_flags: <defaults>
</compile_context>

<pallas_src>
import functools

import jax
import jax.numpy as jnp
from jax.experimental import pallas as pl
from jax.experimental.pallas import tpu as pltpu


def _round_up(x: int, m: int) -> int:
    return ((x + m - 1) // m) * m


def _bilinear_matrix(out_size: int, in_size: int) -> jnp.ndarray:
    """Row-interpolation matrix reproducing F.interpolate(mode='bilinear',
    align_corners=False) exactly (PyTorch source-index convention)."""
    scale = in_size / out_size
    dst = jnp.arange(out_size, dtype=jnp.float32)
    src = scale * (dst + 0.5) - 0.5
    src = jnp.maximum(src, 0.0)                 # PyTorch clamps negative coords to 0
    i0f = jnp.floor(src)
    lam1 = src - i0f
    i0 = jnp.clip(i0f.astype(jnp.int32), 0, in_size - 1)
    i1 = jnp.minimum(i0 + 1, in_size - 1)
    lam0 = 1.0 - lam1
    rows = jnp.arange(out_size)
    w = jnp.zeros((out_size, in_size), jnp.float32)
    w = w.at[rows, i0].add(lam0)
    w = w.at[rows, i1].add(lam1)
    return w


# ----------------------------- in-kernel helpers -----------------------------

def _resize2d(x, wh, wwt, compute_dtype=jnp.float32):
    """out = wh @ x @ wwt, contracting the cheaper side first (trace-time choice).

    `compute_dtype=jnp.bfloat16` can be used for bf16-native MXU rate;
    accumulation stays f32 via preferred_element_type.
    """
    hout, hin = wh.shape
    win, wout = wwt.shape
    x = x.astype(compute_dtype)
    wh = wh.astype(compute_dtype)
    wwt = wwt.astype(compute_dtype)
    cost_rows_first = hout * win * (hin + wout)
    cost_cols_first = hin * wout * (win + hout)
    if cost_rows_first <= cost_cols_first:
        tmp = jnp.dot(wh, x, preferred_element_type=jnp.float32)
        tmp = tmp.astype(compute_dtype)
        return jnp.dot(tmp, wwt, preferred_element_type=jnp.float32)
    tmp = jnp.dot(x, wwt, preferred_element_type=jnp.float32)
    tmp = tmp.astype(compute_dtype)
    return jnp.dot(wh, tmp, preferred_element_type=jnp.float32)


# ----------------------------- Pallas kernels -------------------------------

def _fused_norm_resize_kernel(x_ref, whc_ref, wwtc_ref, whs_ref, wwts_ref,
                              clip_ref, sam_ref, *, mean, inv_std, compute_dtype):
    """For one image (all channels): normalize once, resize to two resolutions.

    mean/inv_std are baked-in Python constants; the interpolation matrices stay
    resident in VMEM; the (C, H, W) image slab is read from HBM once.
    """
    whc = whc_ref[...]
    wwtc = wwtc_ref[...]
    whs = whs_ref[...]
    wwts = wwts_ref[...]
    num_ch = x_ref.shape[0]
    for c in range(num_ch):                       # static unroll, C is tiny (3)
        xn = (x_ref[c].astype(jnp.float32) - mean[c]) * inv_std[c]
        clip_ref[c] = _resize2d(xn, whc, wwtc, compute_dtype)
        sam_ref[c] = _resize2d(xn, whs, wwts, compute_dtype)


def _sigmoid_resize_kernel(x_ref, wh_ref, wwt_ref, o_ref, *, compute_dtype):
    """out = Wh @ sigmoid(x) @ Ww^T for a block of class channels.

    The sem_seg_postprocess crop is already folded into zero columns/rows of
    Wh / Ww^T, so no separate slice of the logits is needed.
    """
    wh = wh_ref[...]
    wwt = wwt_ref[...]
    p = jax.nn.sigmoid(x_ref[...].astype(jnp.float32))   # one EUP pass per block
    num_cls = x_ref.shape[0]
    for k in range(num_cls):                      # static unroll over class block
        o_ref[k] = _resize2d(p[k], wh, wwt, compute_dtype)


# ------------------------------ wrappers -------------------------------------

def normalize_and_dual_resize(images, mean, std, padded_hw, clip_hw, sam_hw,
                              compute_dtype=jnp.float32,
                              vmem_limit_bytes=64 * 1024 * 1024):
    """(x - mean) * (1/std) followed by two bilinear resizes, fused in one kernel.

    images: (B, C, H, W) float32 (UNPADDED). `padded_hw` is the ImageList padded
    size; padding is never materialized -- the padded rows/cols normalize to 0,
    so the interpolation matrices are built on the padded size and truncated to
    the real H/W (bit-identical result, half the HBM traffic, smaller matmuls).
    """
    B, C, H, W = images.shape
    Hp, Wp = padded_hw
    Hc, Wc = clip_hw
    Hs, Ws = sam_hw
    # Lane-dense outputs: round output widths up to a multiple of 128, crop later.
    Wc_pad = _round_up(Wc, 128)
    Ws_pad = _round_up(Ws, 128)

    whc = _bilinear_matrix(Hc, Hp)[:, :H]                              # (Hc, H)
    wwtc = jnp.zeros((W, Wc_pad), jnp.float32).at[:, :Wc].set(
        _bilinear_matrix(Wc, Wp)[:, :W].T)                             # (W, Wc_pad)
    whs = _bilinear_matrix(Hs, Hp)[:, :H]                              # (Hs, H)
    wwts = jnp.zeros((W, Ws_pad), jnp.float32).at[:, :Ws].set(
        _bilinear_matrix(Ws, Wp)[:, :W].T)                             # (W, Ws_pad)

    mean_t = tuple(float(v) for v in jnp.asarray(mean, jnp.float32).reshape(-1))
    inv_std_t = tuple(float(1.0 / v)
                      for v in jnp.asarray(std, jnp.float32).reshape(-1))

    kernel = functools.partial(_fused_norm_resize_kernel,
                               mean=mean_t, inv_std=inv_std_t,
                               compute_dtype=compute_dtype)
    clip_out, sam_out = pl.pallas_call(
        kernel,
        out_shape=(jax.ShapeDtypeStruct((B, C, Hc, Wc_pad), jnp.float32),
                   jax.ShapeDtypeStruct((B, C, Hs, Ws_pad), jnp.float32)),
        grid=(B,),
        in_specs=[
            pl.BlockSpec((None, C, H, W), lambda b: (b, 0, 0, 0)),      # image slab
            pl.BlockSpec((Hc, H), lambda b: (0, 0)),                    # Wh (clip)
            pl.BlockSpec((W, Wc_pad), lambda b: (0, 0)),                # Ww^T (clip)
            pl.BlockSpec((Hs, H), lambda b: (0, 0)),                    # Wh (sam)
            pl.BlockSpec((W, Ws_pad), lambda b: (0, 0)),                # Ww^T (sam)
        ],
        out_specs=(
            pl.BlockSpec((None, C, Hc, Wc_pad), lambda b: (b, 0, 0, 0)),
            pl.BlockSpec((None, C, Hs, Ws_pad), lambda b: (b, 0, 0, 0)),
        ),
        compiler_params=pltpu.CompilerParams(
            dimension_semantics=("parallel",),
            vmem_limit_bytes=vmem_limit_bytes),
    )(images.astype(jnp.float32), whc, wwtc, whs, wwts)
    # TODO(synk): at real 1024x1024 sam resolution on v7x (64 MiB VMEM), add a
    # W-reduction grid axis with an f32 accumulator instead of full-slab blocks.
    return clip_out[..., :Wc], sam_out[..., :Ws]


def sigmoid_crop_and_resize(logits, crop_hw, out_hw, *, k_block=8, h_tile=None,
                            compute_dtype=jnp.float32,
                            vmem_limit_bytes=64 * 1024 * 1024):
    """sem_seg_postprocess: crop to `crop_hw`, sigmoid, bilinear resize to out_hw.

    logits: (K, Hin, Win). The crop is folded into zero-padded interpolation
    matrices (zero weight * sigmoid == 0), so no slice of the logits is made.
    Classes are processed in blocks of `k_block` per grid step (even grid extent
    helps v7x megacore); output width is lane-padded to 128 and cropped after.
    """
    K, Hin, Win = logits.shape
    Ho, Wo = out_hw
    Hc = min(crop_hw[0], Hin)
    Wc = min(crop_hw[1], Win)
    Wo_pad = _round_up(Wo, 128)

    wh = jnp.zeros((Ho, Hin), jnp.float32).at[:, :Hc].set(_bilinear_matrix(Ho, Hc))
    wwt = jnp.zeros((Win, Wo_pad), jnp.float32).at[:Wc, :Wo].set(
        _bilinear_matrix(Wo, Wc).T)

    kb = max(1, min(k_block, K))
    Kpad = _round_up(K, kb)
    if Kpad != K:
        logits = jnp.pad(logits, ((0, Kpad - K), (0, 0), (0, 0)))

    th = Ho if h_tile is None else h_tile          # if tiling, use a multiple of 8
    nh = (Ho + th - 1) // th

    kernel = functools.partial(_sigmoid_resize_kernel, compute_dtype=compute_dtype)
    out = pl.pallas_call(
        kernel,
        out_shape=jax.ShapeDtypeStruct((Kpad, Ho, Wo_pad), jnp.float32),
        grid=(Kpad // kb, nh),
        in_specs=[
            pl.BlockSpec((kb, Hin, Win), lambda k, h: (k, 0, 0)),   # logits block
            pl.BlockSpec((th, Hin), lambda k, h: (h, 0)),           # Wh row-tile
            pl.BlockSpec((Win, Wo_pad), lambda k, h: (0, 0)),       # Ww^T
        ],
        out_specs=pl.BlockSpec((kb, th, Wo_pad), lambda k, h: (k, h, 0)),
        compiler_params=pltpu.CompilerParams(
            dimension_semantics=("parallel", "parallel"),
            vmem_limit_bytes=vmem_limit_bytes),
    )(logits.astype(jnp.float32), wh, wwt)
    return out[:K, :, :Wo]


class ImplicitFusionCATSegVer14aPallas:
    """JAX/Pallas port of the eval (non-sliding-window) forward path."""

    def __init__(self, *, size_divisibility=32,
                 pixel_mean=(123.675, 116.28, 103.53),
                 pixel_std=(58.395, 57.12, 57.375),
                 clip_pixel_mean=(122.7709383, 116.7460125, 104.09373615),
                 clip_pixel_std=(68.5005327, 66.6321579, 70.32316305),
                 clip_resolution=(48, 48),   # scaled-down stand-in for (384, 384)
                 sam_resolution=(64, 64),    # scaled-down stand-in for (1024, 1024)
                 class_block=4,              # classes per grid step (even grid for v7x)
                 compute_dtype=jnp.float32): # set jnp.bfloat16 for bf16 MXU (validate)
        self.size_divisibility = size_divisibility
        self.pixel_mean = tuple(float(v) for v in pixel_mean)
        self.pixel_std = tuple(float(v) for v in pixel_std)
        self.clip_pixel_mean = tuple(float(v) for v in clip_pixel_mean)
        self.clip_pixel_std = tuple(float(v) for v in clip_pixel_std)
        self.clip_resolution = clip_resolution
        self.sam_resolution = sam_resolution
        self.class_block = class_block
        self.compute_dtype = compute_dtype

    def forward_inference(self, image, head_logits, out_height, out_width):
        """image: (C, H, W) float32 (single item of batched_inputs);
        head_logits: (1, K, Hh, Wh) stand-in for the sem_seg_head output."""
        C, H, W = image.shape

        # ImageList.from_tensors pads the *normalized* image with zeros; instead of
        # materializing the padded slab, build the resize matrices on the padded
        # size and truncate to the real H/W (bit-identical: padded pixels are 0).
        div = self.size_divisibility
        pad_h = (-H) % div if div > 0 else 0
        pad_w = (-W) % div if div > 0 else 0
        Hp, Wp = H + pad_h, W + pad_w

        batch = image[None].astype(jnp.float32)   # (1, C, H, W) -- no padding copy

        clip_images_resized, sam_images_resized = normalize_and_dual_resize(
            batch, self.clip_pixel_mean, self.clip_pixel_std,
            padded_hw=(Hp, Wp),
            clip_hw=self.clip_resolution, sam_hw=self.sam_resolution,
            compute_dtype=self.compute_dtype)

        # TODO(synk): clip_model.encode_image(...) and sem_seg_head(...) are external
        # submodules (CLIP ViT / CAT-Seg head / SAM) not defined in this file;
        # `head_logits` stands in for their output `outputs`.
        outputs = head_logits

        # sem_seg_postprocess: crop to the unpadded image size, sigmoid, then
        # bilinear resize to the requested (height, width). The crop is folded
        # into the interpolation matrices inside the kernel.
        # TODO(synk): in the real model the crop indices must be expressed in the
        # head-output coordinate frame (detectron2 sem_seg_postprocess semantics).
        sem_seg = sigmoid_crop_and_resize(
            outputs[0], crop_hw=(H, W), out_hw=(out_height, out_width),
            k_block=self.class_block, compute_dtype=self.compute_dtype)

        return {
            "sem_seg": sem_seg,
            "clip_images_resized": clip_images_resized,
            "sam_images_resized": sam_images_resized,
        }


# ------------------------------ pure-JAX references --------------------------

def _ref_dual_resize(image, mean, std, padded_hw, clip_hw, sam_hw):
    C, H, W = image.shape
    Hp, Wp = padded_hw
    m = jnp.asarray(mean, jnp.float32).reshape(C, 1, 1)
    s = jnp.asarray(std, jnp.float32).reshape(C, 1, 1)
    xn = (image.astype(jnp.float32) - m) / s
    xpad = jnp.zeros((C, Hp, Wp), jnp.float32).at[:, :H, :W].set(xn)

    def rs(x, oh, ow):
        wh = _bilinear_matrix(oh, x.shape[1])
        ww = _bilinear_matrix(ow, x.shape[2])
        return jnp.einsum('oh,chw,pw->cop', wh, x, ww)

    return rs(xpad, *clip_hw), rs(xpad, *sam_hw)


def _ref_postprocess(logits, crop_hw, out_hw):
    K, Hin, Win = logits.shape
    Hc, Wc = min(crop_hw[0], Hin), min(crop_hw[1], Win)
    p = jax.nn.sigmoid(logits[:, :Hc, :Wc].astype(jnp.float32))
    wh = _bilinear_matrix(out_hw[0], Hc)
    ww = _bilinear_matrix(out_hw[1], Wc)
    return jnp.einsum('oh,khw,pw->kop', wh, p, ww)


if __name__ == "__main__":
    key = jax.random.PRNGKey(0)
    k1, k2 = jax.random.split(key)

    C, H, W = 3, 32, 32                 # input image (C, H, W)
    K, Hh, Wh = 8, 12, 12               # synthetic sem_seg_head output (classes, h, w)
    image = jax.random.uniform(k1, (C, H, W), jnp.float32, 0.0, 255.0)
    head_logits = jax.random.normal(k2, (1, K, Hh, Wh), jnp.float32)

    # Case 1: size_divisibility divides H/W -> no implicit padding.
    model = ImplicitFusionCATSegVer14aPallas(size_divisibility=16)
    out = model.forward_inference(image, head_logits, out_height=40, out_width=40)
    out = jax.block_until_ready(out)

    assert out["sem_seg"].shape == (K, 40, 40)
    assert out["clip_images_resized"].shape == (1, C, 48, 48)
    assert out["sam_images_resized"].shape == (1, C, 64, 64)

    ref_clip, ref_sam = _ref_dual_resize(
        image, model.clip_pixel_mean, model.clip_pixel_std,
        padded_hw=(32, 32), clip_hw=(48, 48), sam_hw=(64, 64))
    ref_seg = _ref_postprocess(head_logits[0], crop_hw=(H, W), out_hw=(40, 40))
    assert jnp.allclose(out["clip_images_resized"][0], ref_clip, atol=1e-2, rtol=1e-2)
    assert jnp.allclose(out["sam_images_resized"][0], ref_sam, atol=1e-2, rtol=1e-2)
    assert jnp.allclose(out["sem_seg"], ref_seg, atol=1e-2, rtol=1e-2)

    # Case 2: size_divisibility forces ImageList padding (32 -> 48); exercises the
    # padding-folded resize matrices (same kernel shapes, different weights).
    model_pad = ImplicitFusionCATSegVer14aPallas(size_divisibility=24)
    out_pad = model_pad.forward_inference(image, head_logits,
                                          out_height=40, out_width=40)
    out_pad = jax.block_until_ready(out_pad)
    ref_clip_p, ref_sam_p = _ref_dual_resize(
        image, model_pad.clip_pixel_mean, model_pad.clip_pixel_std,
        padded_hw=(48, 48), clip_hw=(48, 48), sam_hw=(64, 64))
    assert jnp.allclose(out_pad["clip_images_resized"][0], ref_clip_p,
                        atol=1e-2, rtol=1e-2)
    assert jnp.allclose(out_pad["sam_images_resized"][0], ref_sam_p,
                        atol=1e-2, rtol=1e-2)

    print("KERNEL_OK")
</pallas_src>

<mosaic_0001>
module attributes {stable_mosaic.version = 11 : i64} {
  func.func @_fused_norm_resize_kernel(%arg0: i32, %arg1: memref<1x3x32x32xf32, #tpu.memory_space<vmem>>, %arg2: memref<48x32xf32, #tpu.memory_space<vmem>>, %arg3: memref<32x128xf32, #tpu.memory_space<vmem>>, %arg4: memref<64x32xf32, #tpu.memory_space<vmem>>, %arg5: memref<32x128xf32, #tpu.memory_space<vmem>>, %arg6: memref<1x3x48x128xf32, #tpu.memory_space<vmem>>, %arg7: memref<1x3x64x128xf32, #tpu.memory_space<vmem>>) attributes {dimension_semantics = [#tpu.dimension_semantics<parallel>], iteration_bounds = array<i64: 1>, scalar_prefetch = 0 : i64, scratch_operands = 0 : i64, tpu.core_type = #tpu.core_type<tc>, window_params = [{transform_indices = @transform_0, window_bounds = array<i64: 1, 3, 32, 32>}, {pipeline_mode = #tpu.pipeline_mode<synchronous>, transform_indices = @transform_1, window_bounds = array<i64: 48, 32>}, {pipeline_mode = #tpu.pipeline_mode<synchronous>, transform_indices = @transform_2, window_bounds = array<i64: 32, 128>}, {pipeline_mode = #tpu.pipeline_mode<synchronous>, transform_indices = @transform_3, window_bounds = array<i64: 64, 32>}, {pipeline_mode = #tpu.pipeline_mode<synchronous>, transform_indices = @transform_4, window_bounds = array<i64: 32, 128>}, {transform_indices = @transform_5, window_bounds = array<i64: 1, 3, 48, 128>}, {transform_indices = @transform_6, window_bounds = array<i64: 1, 3, 64, 128>}]} {
    %c0 = arith.constant 0 : index
    %c0_0 = arith.constant 0 : index
    %0 = vector.load %arg2[%c0, %c0_0] : memref<48x32xf32, #tpu.memory_space<vmem>>, vector<48x32xf32>
    %c0_1 = arith.constant 0 : index
    %c0_2 = arith.constant 0 : index
    %1 = vector.load %arg3[%c0_1, %c0_2] : memref<32x128xf32, #tpu.memory_space<vmem>>, vector<32x128xf32>
    %c0_3 = arith.constant 0 : index
    %c0_4 = arith.constant 0 : index
    %2 = vector.load %arg4[%c0_3, %c0_4] : memref<64x32xf32, #tpu.memory_space<vmem>>, vector<64x32xf32>
    %c0_5 = arith.constant 0 : index
    %c0_6 = arith.constant 0 : index
    %3 = vector.load %arg5[%c0_5, %c0_6] : memref<32x128xf32, #tpu.memory_space<vmem>>, vector<32x128xf32>
    %c0_7 = arith.constant 0 : index
    %c0_8 = arith.constant 0 : index
    %c0_9 = arith.constant 0 : index
    %c0_10 = arith.constant 0 : index
    %4 = vector.load %arg1[%c0_7, %c0_8, %c0_9, %c0_10] : memref<1x3x32x32xf32, #tpu.memory_space<vmem>>, vector<1x1x32x32xf32>
    %5 = vector.shape_cast %4 : vector<1x1x32x32xf32> to vector<32x32xf32>
    %cst = arith.constant 122.770935 : f32
    %6 = vector.broadcast %cst : f32 to vector<32x32xf32>
    %7 = arith.subf %5, %6 : vector<32x32xf32>
    %cst_11 = arith.constant 0.0145984264 : f32
    %8 = vector.broadcast %cst_11 : f32 to vector<32x32xf32>
    %9 = arith.mulf %7, %8 : vector<32x32xf32>
    %cst_12 = arith.constant dense<0.000000e+00> : vector<48x32xf32>
    %10 = tpu.matmul %0, %9, %cst_12 {dimension_numbers = #tpu.dot_dimension_numbers<[1], [0], [0], [1], [0, 0, 1, 1], [], []>} : vector<48x32xf32>, vector<32x32xf32>, vector<48x32xf32> -> vector<48x32xf32>
    %cst_13 = arith.constant dense<0.000000e+00> : vector<48x128xf32>
    %11 = tpu.matmul %10, %1, %cst_13 {dimension_numbers = #tpu.dot_dimension_numbers<[1], [0], [0], [1], [0, 0, 1, 1], [], []>} : vector<48x32xf32>, vector<32x128xf32>, vector<48x128xf32> -> vector<48x128xf32>
    %c0_14 = arith.constant 0 : index
    %c0_15 = arith.constant 0 : index
    %c0_16 = arith.constant 0 : index
    %c0_17 = arith.constant 0 : index
    %12 = vector.load %arg6[%c0_14, %c0_15, %c0_16, %c0_17] : memref<1x3x48x128xf32, #tpu.memory_space<vmem>>, vector<1x1x48x128xf32>
    %13 = vector.shape_cast %12 : vector<1x1x48x128xf32> to vector<48x128xf32>
    %14 = vector.shape_cast %11 : vector<48x128xf32> to vector<1x1x48x128xf32>
    tpu.vector_store %arg6[%c0_14, %c0_15, %c0_16, %c0_17], %14 {strides = array<i32>} : memref<1x3x48x128xf32, #tpu.memory_space<vmem>>, vector<1x1x48x128xf32>,
    %cst_18 = arith.constant dense<0.000000e+00> : vector<64x32xf32>
    %15 = tpu.matmul %2, %9, %cst_18 {dimension_numbers = #tpu.dot_dimension_numbers<[1], [0], [0], [1], [0, 0, 1, 1], [], []>} : vector<64x32xf32>, vector<32x32xf32>, vector<64x32xf32> -> vector<64x32xf32>
    %cst_19 = arith.constant dense<0.000000e+00> : vector<64x128xf32>
    %16 = tpu.matmul %15, %3, %cst_19 {dimension_numbers = #tpu.dot_dimension_numbers<[1], [0], [0], [1], [0, 0, 1, 1], [], []>} : vector<64x32xf32>, vector<32x128xf32>, vector<64x128xf32> -> vector<64x128xf32>
    %c0_20 = arith.constant 0 : index
    %c0_21 = arith.constant 0 : index
    %c0_22 = arith.constant 0 : index
    %c0_23 = arith.constant 0 : index
    %17 = vector.load %arg7[%c0_20, %c0_21, %c0_22, %c0_23] : memref<1x3x64x128xf32, #tpu.memory_space<vmem>>, vector<1x1x64x128xf32>
    %18 = vector.shape_cast %17 : vector<1x1x64x128xf32> to vector<64x128xf32>
    %19 = vector.shape_cast %16 : vector<64x128xf32> to vector<1x1x64x128xf32>
    tpu.vector_store %arg7[%c0_20, %c0_21, %c0_22, %c0_23], %19 {strides = array<i32>} : memref<1x3x64x128xf32, #tpu.memory_space<vmem>>, vector<1x1x64x128xf32>,
    %c0_24 = arith.constant 0 : index
    %c1 = arith.constant 1 : index
    %c0_25 = arith.constant 0 : index
    %c0_26 = arith.constant 0 : index
    %20 = vector.load %arg1[%c0_24, %c1, %c0_25, %c0_26] : memref<1x3x32x32xf32, #tpu.memory_space<vmem>>, vector<1x1x32x32xf32>
    %21 = vector.shape_cast %20 : vector<1x1x32x32xf32> to vector<32x32xf32>
    %cst_27 = arith.constant 116.74601 : f32
    %22 = vector.broadcast %cst_27 : f32 to vector<32x32xf32>
    %23 = arith.subf %21, %22 : vector<32x32xf32>
    %cst_28 = arith.constant 0.0150077688 : f32
    %24 = vector.broadcast %cst_28 : f32 to vector<32x32xf32>
    %25 = arith.mulf %23, %24 : vector<32x32xf32>
    %cst_29 = arith.constant dense<0.000000e+00> : vector<48x32xf32>
    %26 = tpu.matmul %0, %25, %cst_29 {dimension_numbers = #tpu.dot_dimension_numbers<[1], [0], [0], [1], [0, 0, 1, 1], [], []>} : vector<48x32xf32>, vector<32x32xf32>, vector<48x32xf32> -> vector<48x32xf32>
    %cst_30 = arith.constant dense<0.000000e+00> : vector<48x128xf32>
    %27 = tpu.matmul %26, %1, %cst_30 {dimension_numbers = #tpu.dot_dimension_numbers<[1], [0], [0], [1], [0, 0, 1, 1], [], []>} : vector<48x32xf32>, vector<32x128xf32>, vector<48x128xf32> -> vector<48x128xf32>
    %c0_31 = arith.constant 0 : index
    %c1_32 = arith.constant 1 : index
    %c0_33 = arith.constant 0 : index
    %c0_34 = arith.constant 0 : index
    %28 = vector.load %arg6[%c0_31, %c1_32, %c0_33, %c0_34] : memref<1x3x48x128xf32, #tpu.memory_space<vmem>>, vector<1x1x48x128xf32>
    %29 = vector.shape_cast %28 : vector<1x1x48x128xf32> to vector<48x128xf32>
    %30 = vector.shape_cast %27 : vector<48x128xf32> to vector<1x1x48x128xf32>
    tpu.vector_store %arg6[%c0_31, %c1_32, %c0_33, %c0_34], %30 {strides = array<i32>} : memref<1x3x48x128xf32, #tpu.memory_space<vmem>>, vector<1x1x48x128xf32>,
    %cst_35 = arith.constant dense<0.000000e+00> : vector<64x32xf32>
    %31 = tpu.matmul %2, %25, %cst_35 {dimension_numbers = #tpu.dot_dimension_numbers<[1], [0], [0], [1], [0, 0, 1, 1], [], []>} : vector<64x32xf32>, vector<32x32xf32>, vector<64x32xf32> -> vector<64x32xf32>
    %cst_36 = arith.constant dense<0.000000e+00> : vector<64x128xf32>
    %32 = tpu.matmul %31, %3, %cst_36 {dimension_numbers = #tpu.dot_dimension_numbers<[1], [0], [0], [1], [0, 0, 1, 1], [], []>} : vector<64x32xf32>, vector<32x128xf32>, vector<64x128xf32> -> vector<64x128xf32>
    %c0_37 = arith.constant 0 : index
    %c1_38 = arith.constant 1 : index
    %c0_39 = arith.constant 0 : index
    %c0_40 = arith.constant 0 : index
    %33 = vector.load %arg7[%c0_37, %c1_38, %c0_39, %c0_40] : memref<1x3x64x128xf32, #tpu.memory_space<vmem>>, vector<1x1x64x128xf32>
    %34 = vector.shape_cast %33 : vector<1x1x64x128xf32> to vector<64x128xf32>
    %35 = vector.shape_cast %32 : vector<64x128xf32> to vector<1x1x64x128xf32>
    tpu.vector_store %arg7[%c0_37, %c1_38, %c0_39, %c0_40], %35 {strides = array<i32>} : memref<1x3x64x128xf32, #tpu.memory_space<vmem>>, vector<1x1x64x128xf32>,
    %c0_41 = arith.constant 0 : index
    %c2 = arith.constant 2 : index
    %c0_42 = arith.constant 0 : index
    %c0_43 = arith.constant 0 : index
    %36 = vector.load %arg1[%c0_41, %c2, %c0_42, %c0_43] : memref<1x3x32x32xf32, #tpu.memory_space<vmem>>, vector<1x1x32x32xf32>
    %37 = vector.shape_cast %36 : vector<1x1x32x32xf32> to vector<32x32xf32>
    %cst_44 = arith.constant 104.093735 : f32
    %38 = vector.broadcast %cst_44 : f32 to vector<32x32xf32>
    %39 = arith.subf %37, %38 : vector<32x32xf32>
    %cst_45 = arith.constant 0.0142200654 : f32
    %40 = vector.broadcast %cst_45 : f32 to vector<32x32xf32>
    %41 = arith.mulf %39, %40 : vector<32x32xf32>
    %cst_46 = arith.constant dense<0.000000e+00> : vector<48x32xf32>
    %42 = tpu.matmul %0, %41, %cst_46 {dimension_numbers = #tpu.dot_dimension_numbers<[1], [0], [0], [1], [0, 0, 1, 1], [], []>} : vector<48x32xf32>, vector<32x32xf32>, vector<48x32xf32> -> vector<48x32xf32>
    %cst_47 = arith.constant dense<0.000000e+00> : vector<48x128xf32>
    %43 = tpu.matmul %42, %1, %cst_47 {dimension_numbers = #tpu.dot_dimension_numbers<[1], [0], [0], [1], [0, 0, 1, 1], [], []>} : vector<48x32xf32>, vector<32x128xf32>, vector<48x128xf32> -> vector<48x128xf32>
    %c0_48 = arith.constant 0 : index
    %c2_49 = arith.constant 2 : index
    %c0_50 = arith.constant 0 : index
    %c0_51 = arith.constant 0 : index
    %44 = vector.load %arg6[%c0_48, %c2_49, %c0_50, %c0_51] : memref<1x3x48x128xf32, #tpu.memory_space<vmem>>, vector<1x1x48x128xf32>
    %45 = vector.shape_cast %44 : vector<1x1x48x128xf32> to vector<48x128xf32>
    %46 = vector.shape_cast %43 : vector<48x128xf32> to vector<1x1x48x128xf32>
    tpu.vector_store %arg6[%c0_48, %c2_49, %c0_50, %c0_51], %46 {strides = array<i32>} : memref<1x3x48x128xf32, #tpu.memory_space<vmem>>, vector<1x1x48x128xf32>,
    %cst_52 = arith.constant dense<0.000000e+00> : vector<64x32xf32>
    %47 = tpu.matmul %2, %41, %cst_52 {dimension_numbers = #tpu.dot_dimension_numbers<[1], [0], [0], [1], [0, 0, 1, 1], [], []>} : vector<64x32xf32>, vector<32x32xf32>, vector<64x32xf32> -> vector<64x32xf32>
    %cst_53 = arith.constant dense<0.000000e+00> : vector<64x128xf32>
    %48 = tpu.matmul %47, %3, %cst_53 {dimension_numbers = #tpu.dot_dimension_numbers<[1], [0], [0], [1], [0, 0, 1, 1], [], []>} : vector<64x32xf32>, vector<32x128xf32>, vector<64x128xf32> -> vector<64x128xf32>
    %c0_54 = arith.constant 0 : index
    %c2_55 = arith.constant 2 : index
    %c0_56 = arith.constant 0 : index
    %c0_57 = arith.constant 0 : index
    %49 = vector.load %arg7[%c0_54, %c2_55, %c0_56, %c0_57] : memref<1x3x64x128xf32, #tpu.memory_space<vmem>>, vector<1x1x64x128xf32>
    %50 = vector.shape_cast %49 : vector<1x1x64x128xf32> to vector<64x128xf32>
    %51 = vector.shape_cast %48 : vector<64x128xf32> to vector<1x1x64x128xf32>
    tpu.vector_store %arg7[%c0_54, %c2_55, %c0_56, %c0_57], %51 {strides = array<i32>} : memref<1x3x64x128xf32, #tpu.memory_space<vmem>>, vector<1x1x64x128xf32>,
    return
  }
  func.func @transform_0(%arg0: i32) -> (i32, i32, i32, i32) {
    %c0_i32 = arith.constant 0 : i32
    %c0_i32_0 = arith.constant 0 : i32
    %c0_i32_1 = arith.constant 0 : i32
    %c0_i32_2 = arith.constant 0 : i32
    return %arg0, %c0_i32, %c0_i32_0, %c0_i32_1 : i32, i32, i32, i32
  }
  func.func @transform_1(%arg0: i32) -> (i32, i32) {
    %c0_i32 = arith.constant 0 : i32
    %c0_i32_0 = arith.constant 0 : i32
    %c0_i32_1 = arith.constant 0 : i32
    return %c0_i32, %c0_i32_0 : i32, i32
  }
  func.func @transform_2(%arg0: i32) -> (i32, i32) {
    %c0_i32 = arith.constant 0 : i32
    %c0_i32_0 = arith.constant 0 : i32
    %c0_i32_1 = arith.constant 0 : i32
    return %c0_i32, %c0_i32_0 : i32, i32
  }
  func.func @transform_3(%arg0: i32) -> (i32, i32) {
    %c0_i32 = arith.constant 0 : i32
    %c0_i32_0 = arith.constant 0 : i32
    %c0_i32_1 = arith.constant 0 : i32
    return %c0_i32, %c0_i32_0 : i32, i32
  }
  func.func @transform_4(%arg0: i32) -> (i32, i32) {
    %c0_i32 = arith.constant 0 : i32
    %c0_i32_0 = arith.constant 0 : i32
    %c0_i32_1 = arith.constant 0 : i32
    return %c0_i32, %c0_i32_0 : i32, i32
  }
  func.func @transform_5(%arg0: i32) -> (i32, i32, i32, i32) {
    %c0_i32 = arith.constant 0 : i32
    %c0_i32_0 = arith.constant 0 : i32
    %c0_i32_1 = arith.constant 0 : i32
    %c0_i32_2 = arith.constant 0 : i32
    return %arg0, %c0_i32, %c0_i32_0, %c0_i32_1 : i32, i32, i32, i32
  }
  func.func @transform_6(%arg0: i32) -> (i32, i32, i32, i32) {
    %c0_i32 = arith.constant 0 : i32
    %c0_i32_0 = arith.constant 0 : i32
    %c0_i32_1 = arith.constant 0 : i32
    %c0_i32_2 = arith.constant 0 : i32
    return %arg0, %c0_i32, %c0_i32_0, %c0_i32_1 : i32, i32, i32, i32
  }
}

</mosaic_0001>

<bundles_post_ra>
// kernel: tpu_custom_call.1
= control target key start
LH: loop header
LB: loop body
LE: loop exit
PB: predicated region body
PF: predicated region fallthrough
CT: control target
= control target key end

     0   :  { %12 = vsyncpa [#allocation3], 0  ;;  %s2645_s0 = inlined_call_operand.hbm [shape: f32[1,3,32,32], index: 0, kind: input, shape index: {}]   ;;  %s2646_s1 = inlined_call_operand.hbm [shape: f32[48,32], index: 1, kind: input, shape index: {}]   ;;  %s2647_s2 = inlined_call_operand.hbm [shape: f32[32,128], index: 2, kind: input, shape index: {}]   ;;  %s2648_s3 = inlined_call_operand.hbm [shape: f32[64,32], index: 3, kind: input, shape index: {}]   ;;  %s2649_s4 = inlined_call_operand.hbm [shape: f32[32,128], index: 4, kind: input, shape index: {}]   ;;  %s2650_s5 = inlined_call_operand.hbm [shape: f32[1,3,48,128], index: 5, kind: output, shape index: {0}]   ;;  %s2651_s6 = inlined_call_operand.hbm [shape: f32[1,3,64,128], index: 6, kind: output, shape index: {1}]  }
   0x1   :  { %13 = vsyncpa [#allocation6], 0 }
   0x2   :  { %14 = vsyncpa [#allocation9], 0 }
   0x3   :  { %15 = vsyncpa [#allocation4], 0 }
   0x4   :  { %16 = vsyncpa [#allocation13], 0  ;;  %s2321_s21 = smov [#allocation5]   ;;  %s2322_s23 = smov [#allocation8]  }
   0x5   :  { %s34_s22 = sshll.u32 %s2321_s21, 4  ;;  %s58_s24 = sshll.u32 %s2322_s23, 4  ;;  %s35_s22 = int_to_ptr.vmem [resolvable:$true] %s34_s22  ;;  %s2365_s24 = int_to_ptr.vmem [resolvable:$true] %s58_s24 }
   0x6   :  { %s2157_s27 = scalar_lea.hbm %s2646_s1, 768 }
   0x7   :  { %p2158_p0 = scmp.ne.s32.totalorder %s2646_s1, %s2157_s27  ;;  %p2161_p1 = scmp.lt.u32.totalorder %s2157_s27, %s2646_s1 }
   0x9   :  { %p2163_p2 = pnand %p2161_p1, %p2158_p0 }
   0xb   :  { %2166 = shalt.err (!%p2163_p2)
}
   0xc   :  { %s2167_s8 = scalar_lea.vmem %s35_s22, 768  ;;  %p2172_p4 = scmp.lt.s32.totalorder %s35_s22, %s35_s22 }
   0xd   :  { %p2168_p3 = scmp.ne.s32.totalorder %s35_s22, %s2167_s8  ;;  %p2173_p5 = scmp.lt.s32.totalorder %s2167_s8, %s2167_s8 }
   0xf   :  { %p2174_p6 = por %p2173_p5, %p2172_p4 }
  0x11   :  { %p2175_p7 = pnand %p2174_p6, %p2168_p3 }
  0x13   :  { %2178 = shalt.err (!%p2175_p7)
}
  0x14   :  { %s2323_s9 = smov 128   ;;  %s2324_s10 = smov 8  }
  0x15   :  { %40 = dma.hbm_to_vmem [thread:$0]  %s2646_s1, 768, %s35_s22, [#allocation6], %s2323_s9, %s2323_s9, %s2324_s10  }
  0x16   :  { %s2179_s15 = scalar_lea.hbm %s2648_s3, 1024 }
  0x17   :  { %p2180_p8 = scmp.ne.s32.totalorder %s2648_s3, %s2179_s15  ;;  %p2183_p9 = scmp.lt.u32.totalorder %s2179_s15, %s2648_s3 }
  0x19   :  { %p2185_p10 = pnand %p2183_p9, %p2180_p8 }
  0x1b   :  { %2188 = shalt.err (!%p2185_p10)
}
  0x1c   :  { %s2189_s20 = scalar_lea.vmem %s2365_s24, 1024  ;;  %p2194_p12 = scmp.lt.s32.totalorder %s2365_s24, %s2365_s24 }
  0x1d   :  { %p2190_p11 = scmp.ne.s32.totalorder %s2365_s24, %s2189_s20  ;;  %p2195_p13 = scmp.lt.s32.totalorder %s2189_s20, %s2189_s20 }
  0x1f   :  { %p2196_p0 = por %p2195_p13, %p2194_p12 }
  0x21   :  { %p2197_p1 = pnand %p2196_p0, %p2190_p11 }
  0x23   :  { %2200 = shalt.err (!%p2197_p1)
}
  0x24   :  { %64 = dma.hbm_to_vmem [thread:$0]  %s2648_s3, 1024, %s2365_s24, [#allocation9], %s2323_s9, %s2323_s9, %s2324_s10  }
  0x25   :  { %s2325_s22 = smov [#allocation2]   ;;  %s2326_s25 = smov [#allocation7]  }
  0x26   :  { %s22_s23 = sshll.u32 %s2325_s22, 4  ;;  %s46_s26 = sshll.u32 %s2326_s25, 4  ;;  %s23_s23 = int_to_ptr.vmem [resolvable:$true] %s22_s23  ;;  %s2402_s26 = int_to_ptr.vmem [resolvable:$true] %s46_s26 }
  0x27   :  { %s2201_s29 = scalar_lea.hbm %s2645_s0, 1536 }
  0x28   :  { %p2202_p2 = scmp.ne.s32.totalorder %s2645_s0, %s2201_s29  ;;  %p2205_p3 = scmp.lt.u32.totalorder %s2201_s29, %s2645_s0 }
  0x2a   :  { %p2207_p4 = pnand %p2205_p3, %p2202_p2 }
  0x2c   :  { %2210 = shalt.err (!%p2207_p4)
}
  0x2d   :  { %s2211_s3 = scalar_lea.vmem %s23_s23, 1536  ;;  %p2216_p6 = scmp.lt.s32.totalorder %s23_s23, %s23_s23 }
  0x2e   :  { %p2212_p5 = scmp.ne.s32.totalorder %s23_s23, %s2211_s3  ;;  %p2217_p7 = scmp.lt.s32.totalorder %s2211_s3, %s2211_s3 }
  0x30   :  { %p2218_p8 = por %p2217_p7, %p2216_p6 }
  0x32   :  { %p2219_p9 = pnand %p2218_p8, %p2212_p5 }
  0x34   :  { %2222 = shalt.err (!%p2219_p9)
}
  0x35   :  { %28 = dma.hbm_to_vmem [thread:$0]  %s2645_s0, 1536, %s23_s23, [#allocation3], %s2323_s9, %s2323_s9, %s2324_s10  }
  0x36   :  { %s2223_s15 = scalar_lea.hbm %s2647_s2, 512 }
  0x37   :  { %p2224_p10 = scmp.ne.s32.totalorder %s2647_s2, %s2223_s15  ;;  %p2227_p11 = scmp.lt.u32.totalorder %s2223_s15, %s2647_s2 }
  0x39   :  { %p2229_p12 = pnand %p2227_p11, %p2224_p10 }
  0x3b   :  { %2232 = shalt.err (!%p2229_p12)
}
  0x3c   :  { %s2233_s20 = scalar_lea.vmem %s2402_s26, 512  ;;  %p2238_p0 = scmp.lt.s32.totalorder %s2402_s26, %s2402_s26 }
  0x3d   :  { %p2234_p13 = scmp.ne.s32.totalorder %s2402_s26, %s2233_s20  ;;  %p2239_p1 = scmp.lt.s32.totalorder %s2233_s20, %s2233_s20 }
  0x3f   :  { %p2240_p2 = por %p2239_p1, %p2238_p0 }
  0x41   :  { %p2241_p3 = pnand %p2240_p2, %p2234_p13 }
  0x43   :  { %2244 = shalt.err (!%p2241_p3)
}
  0x44   :  { %52 = dma.hbm_to_vmem [thread:$0]  %s2647_s2, 512, %s2402_s26, [#allocation6], %s2323_s9, %s2323_s9, %s2324_s10  }
  0x45   :  { %s2327_s21 = smov [#allocation10]   ;;  %s2245_s27 = scalar_lea.hbm %s2649_s4, 512 }
  0x46   :  { %s70_s22 = sshll.u32 %s2327_s21, 4  ;;  %p2246_p4 = scmp.ne.s32.totalorder %s2649_s4, %s2245_s27  ;;  %s71_s22 = int_to_ptr.vmem [resolvable:$true] %s70_s22 }
  0x47   :  { %p2249_p5 = scmp.lt.u32.totalorder %s2245_s27, %s2649_s4 }
  0x49   :  { %p2251_p6 = pnand %p2249_p5, %p2246_p4 }
  0x4b   :  { %2254 = shalt.err (!%p2251_p6)
}
  0x4c   :  { %s2255_s8 = scalar_lea.vmem %s71_s22, 512  ;;  %p2260_p8 = scmp.lt.s32.totalorder %s71_s22, %s71_s22 }
  0x4d   :  { %p2256_p7 = scmp.ne.s32.totalorder %s71_s22, %s2255_s8  ;;  %p2261_p9 = scmp.lt.s32.totalorder %s2255_s8, %s2255_s8 }
  0x4f   :  { %p2262_p10 = por %p2261_p9, %p2260_p8 }
  0x51   :  { %p2263_p11 = pnand %p2262_p10, %p2256_p7 }
  0x53   :  { %2266 = shalt.err (!%p2263_p11)
}
  0x54   :  { %76 = dma.hbm_to_vmem [thread:$0]  %s2649_s4, 512, %s71_s22, [#allocation9], %s2323_s9, %s2323_s9, %s2324_s10  }
  0x55   :  { %2311 = dma.done.wait [#allocation3], 1536  }
  0x56   :  { %2312 = vsyncadd [#allocation3], 4294965760 }
  0x57   :  { %2313 = dma.done.wait [#allocation6], 1280  }
  0x58   :  { %2314 = vsyncadd [#allocation6], 4294966016 }
  0x59   :  { %2315 = dma.done.wait [#allocation9], 1536  }
  0x5a   :  { %2316 = vsyncadd [#allocation9], 4294965760  ;;  %vm126_vm0 = vcmask 261120   ;;  %v114_v0 = vld [vmem:[#allocation2] sm:$0xff]  ;;  %v115_v1 = vld [vmem:[#allocation2 + $0x8] sm:$0xff]  ;;  %s2328_s4 = smov [#allocation11]  }
  0x5b   :  { %v116_v2 = vld [vmem:[#allocation2 + $0x10] sm:$0xff]  ;;  %v1602_v3 = vadd.f32 -122.770935, %v114_v0  ;;  %v1603_v4 = vadd.f32 -122.770935, %v115_v1  ;;  %v117_v5 = vld [vmem:[#allocation2 + $0x18] sm:$0xff] }
  0x5c   :  { %v2454_v6 = vld [vmem:[#allocation5] sm:$0xff]  ;;  %v1604_v7 = vadd.f32 -122.770935, %v116_v2  ;;  %v1605_v8 = vadd.f32 -122.770935, %v117_v5  ;;  %v627_v16 = vld [vmem:[#allocation2 + $0x28] sm:$0xff] }
  0x5d   :  { %1838 = vmatprep.mubr.msk.f32.mxu0 %vm126_vm0, %v2454_v6  ;;  %v122_v9 = vmul.f32 0.014598426, %v1602_v3  ;;  %v123_v10 = vmul.f32 0.014598426, %v1603_v4  ;;  %v626_v14 = vld [vmem:[#allocation2 + $0x20] sm:$0xff]  ;;  %v2458_v19 = vld [vmem:[#allocation5 + $0x8] sm:$0xff] }
  0x5e   :  { %v124_v11 = vmul.f32 0.014598426, %v1604_v7  ;;  %v125_v12 = vmul.f32 0.014598426, %v1605_v8  ;;  %v1634_v17 = vadd.f32 -116.74601, %v626_v14 }
  0x5f   :  { %v2052_v13 = vpack.c.bf16 %v123_v10, %v122_v9  ;;  %v1635_v18 = vadd.f32 -116.74601, %v627_v16  ;;  %v2460_v20 = vld [vmem:[#allocation5 + $0x10] sm:$0xff]  ;;  %v99_v24 = vld [vmem:[#allocation7 + $0x8] sm:$0xff]  ;;  %v100_v25 = vld [vmem:[#allocation7 + $0x10] sm:$0xff]  ;;  %s1572_s11 = sshll.u32 %s2328_s4, 4  ;;  %s1573_s11 = int_to_ptr.vmem [resolvable:$true] %s1572_s11 }
  0x60   :  { %v2056_v15 = vpack.c.bf16 %v125_v12, %v124_v11  ;;  %v634_v21 = vmul.f32 0.015007769, %v1634_v17  ;;  %v98_v23 = vld [vmem:[#allocation7] sm:$0xff]  ;;  %v629_v27 = vld [vmem:[#allocation2 + $0x38] sm:$0xff]  ;;  %v101_v29 = vld [vmem:[#allocation7 + $0x18] sm:$0xff]  ;;  %s2267_s3 = scalar_lea.vmem %s1573_s11, 2304  ;;  %p2272_p13 = scmp.lt.s32.totalorder %s1573_s11, %s1573_s11 }
  0x61   :  { %2053 = vmatprep.subr.bf16.mxu0 %v2052_v13  ;;  %v635_v22 = vmul.f32 0.015007769, %v1635_v18  ;;  %v628_v26 = vld [vmem:[#allocation2 + $0x30] sm:$0xff]  ;;  %v2462_v28 = vpack.c.bf16 %v99_v24, %v98_v23  ;;  %v2466_v30 = vpack.c.bf16 %v101_v29, %v100_v25  ;;  %v2470_v31 = vld [vmem:[#allocation5 + $0x18] sm:$0xff]  ;;  %v2472_v32 = vld [vmem:[#allocation5 + $0x20] sm:$0xff]  ;;  %p2268_p12 = scmp.ne.s32.totalorder %s1573_s11, %s2267_s3  ;;  %p2273_p0 = scmp.lt.s32.totalorder %s2267_s3, %s2267_s3 }
  0x62   :  { %2055 = vmatpush3.bf16.msra.mxu0 %v2052_v13  ;;  %v1636_v34 = vadd.f32 -116.74601, %v628_v26  ;;  %v1637_v35 = vadd.f32 -116.74601, %v629_v27  ;;  %v2481_v36 = vld [vmem:[#allocation5 + $0x28] sm:$0xff]  ;;  %v2483_v37 = vld [vmem:[#allocation8] sm:$0xff] }
  0x63   :  { %2057 = vmatprep.subr.bf16.mxu0 %v2056_v15  ;;  %v2084_v33 = vpack.c.bf16 %v635_v22, %v634_v21  ;;  %2061 = vmatprep.subr.bf16.mxu1 %v2462_v28  ;;  %v2490_v40 = vld [vmem:[#allocation8 + $0x8] sm:$0xff]  ;;  %v2492_v41 = vld [vmem:[#allocation8 + $0x10] sm:$0xff]  ;;  %v105_v43 = vld [vmem:[#allocation8 + $0x18] sm:$0xff]  ;;  %p2274_p1 = por %p2273_p0, %p2272_p13 }
  0x64   :  { %2063 = vmatpush3.bf16.msra.mxu1 %v2462_v28  ;;  %v636_v38 = vmul.f32 0.015007769, %v1636_v34  ;;  %v637_v39 = vmul.f32 0.015007769, %v1637_v35  ;;  %v106_v44 = vld [vmem:[#allocation8 + $0x20] sm:$0xff]  ;;  %v107_v45 = vld [vmem:[#allocation8 + $0x28] sm:$0xff] }
  0x65   :  { %2065 = vmatprep.subr.bf16.mxu1 %v2466_v30  ;;  %v108_v46 = vld [vmem:[#allocation8 + $0x30] sm:$0xff]  ;;  %v1098_v48 = vld [vmem:[#allocation2 + $0x48] sm:$0xff]  ;;  %v1099_v54 = vld [vmem:[#allocation2 + $0x50] sm:$0xff]  ;;  %p2275_p2 = pnand %p2274_p1, %p2268_p12 }
  0x66   :  { %2059 = vmatpush3.bf16.msra.mxu0 %v2056_v15  ;;  %v2088_v42 = vpack.c.bf16 %v637_v39, %v636_v38  ;;  %v1097_v47 = vld [vmem:[#allocation2 + $0x40] sm:$0xff]  ;;  %v109_v49 = vld [vmem:[#allocation8 + $0x38] sm:$0xff]  ;;  %v1667_v51 = vadd.f32 -104.093735, %v1098_v48  ;;  %v1100_v55 = vld [vmem:[#allocation2 + $0x58] sm:$0xff] }
  0x67   :  { %2069 = vmatprep.subr.bf16.mxu0 %v2052_v13  ;;  %v1666_v50 = vadd.f32 -104.093735, %v1097_v47  ;;  %v1668_v57 = vadd.f32 -104.093735, %v1099_v54  ;;  %v1669_v58 = vadd.f32 -104.093735, %v1100_v55 }
  0x68   :  { %2067 = vmatpush3.bf16.msra.mxu1 %v2466_v30  ;;  %v1106_v53 = vmul.f32 0.014220065, %v1667_v51  ;;  %v110_v62 = vld [vmem:[#allocation10] sm:$0xff]  ;;  %v111_v63 = vld [vmem:[#allocation10 + $0x8] sm:$0xff]  ;;  %v112_v1 = vld [vmem:[#allocation10 + $0x10] sm:$0xff] }
  0x69   :  { %1839 = vmatmul.mubr.msk.f32.vlgmr.msra.gmra.mrb[0].mxu0 %vm126_vm0, %v2458_v19  ;;  %v1105_v52 = vmul.f32 0.014220065, %v1666_v50  ;;  %v1107_v59 = vmul.f32 0.014220065, %v1668_v57  ;;  %v1108_v60 = vmul.f32 0.014220065, %v1669_v58  ;;  %v2549_v0 = vpack.c.bf16 %v111_v63, %v110_v62 }
  0x6a   :  { %2071 = vmatpush3.bf16.msra.mxu0 %v2052_v13  ;;  %1841 = vmatprep.mubr.msk.f32.mxu0 %vm126_vm0, %v2460_v20  ;;  %v113_v2 = vld [vmem:[#allocation10 + $0x18] sm:$0xff] }
  0x6b   :  { %2073 = vmatprep.subr.bf16.mxu0 %v2056_v15  ;;  %v2116_v56 = vpack.c.bf16 %v1106_v53, %v1105_v52  ;;  %v2120_v61 = vpack.c.bf16 %v1108_v60, %v1107_v59  ;;  %2077 = vmatprep.subr.bf16.mxu1 %v2549_v0  ;;  %v2552_v5 = vpack.c.bf16 %v113_v2, %v112_v1 }
  0x6d   :  { %1842 = vmatmul.mubr.msk.f32.gmra.mrb[2].mxu0 %vm126_vm0, %v2470_v31 }
  0x6e   :  { %1844 = vmatprep.mubr.msk.f32.mxu0 %vm126_vm0, %v2472_v32  ;;  %2075 = vmatpush3.bf16.msra.mxu0 %v2056_v15 }
  0x6f   :  { %2085 = vmatprep.subr.bf16.mxu0 %v2084_v33 }
  0x71   :  { %1845 = vmatmul.mubr.msk.f32.gmra.mrb[4].mxu0 %vm126_vm0, %v2481_v36 }
  0x72   :  { %1872 = vmatprep.mubr.msk.f32.mxu0 %vm126_vm0, %v2483_v37 }
  0x75   :  { %1873 = vmatmul.mubr.msk.f32.vlgmr.msra.gmra.mrb[6].mxu0 %vm126_vm0, %v2490_v40 }
  0x76   :  { %2087 = vmatpush3.bf16.msra.mxu0 %v2084_v33  ;;  %1875 = vmatprep.mubr.msk.f32.mxu0 %vm126_vm0, %v2492_v41 }
  0x77   :  { %2089 = vmatprep.subr.bf16.mxu0 %v2088_v42 }
  0x79   :  { %1876 = vmatmul.mubr.msk.f32.gmra.mrb[8].mxu0 %vm126_vm0, %v105_v43 }
  0x7a   :  { %1878 = vmatprep.mubr.msk.f32.mxu0 %vm126_vm0, %v106_v44  ;;  %2091 = vmatpush3.bf16.msra.mxu0 %v2088_v42 }
  0x7b   :  { %2101 = vmatprep.subr.bf16.mxu0 %v2084_v33 }
  0x7d   :  { %1879 = vmatmul.mubr.msk.f32.gmra.mrb[10].mxu0 %vm126_vm0, %v107_v45 }
  0x7e   :  { %1881 = vmatprep.mubr.msk.f32.mxu0 %vm126_vm0, %v108_v46 }
  0x81   :  { %1882 = vmatmul.mubr.msk.f32.gmra.mrb[12].mxu0 %vm126_vm0, %v109_v49 }
  0x82   :  { %1912 = vmatprep.mubr.msk.f32.mxu0 %vm126_vm0, %v2454_v6 }
  0x85   :  { %1913 = vmatmul.mubr.msk.f32.vlgmr.msra.gmra.mrb[14].mxu0 %vm126_vm0, %v2458_v19 }
  0x86   :  { %2103 = vmatpush3.bf16.msra.mxu0 %v2084_v33  ;;  %1915 = vmatprep.mubr.msk.f32.mxu0 %vm126_vm0, %v2460_v20 }
  0x87   :  { %2105 = vmatprep.subr.bf16.mxu0 %v2088_v42 }
  0x89   :  { %1916 = vmatmul.mubr.msk.f32.gmra.mrb[16].mxu0 %vm126_vm0, %v2470_v31 }
  0x8a   :  { %1918 = vmatprep.mubr.msk.f32.mxu0 %vm126_vm0, %v2472_v32  ;;  %2107 = vmatpush3.bf16.msra.mxu0 %v2088_v42 }
  0x8b   :  { %2117 = vmatprep.subr.bf16.mxu0 %v2116_v56 }
  0x8d   :  { %1919 = vmatmul.mubr.msk.f32.gmra.mrb[18].mxu0 %vm126_vm0, %v2481_v36 }
  0x8e   :  { %1946 = vmatprep.mubr.msk.f32.mxu0 %vm126_vm0, %v2483_v37 }
  0x91   :  { %1947 = vmatmul.mubr.msk.f32.vlgmr.msra.gmra.mrb[20].mxu0 %vm126_vm0, %v2490_v40 }
  0x92   :  { %2119 = vmatpush3.bf16.msra.mxu0 %v2116_v56  ;;  %1949 = vmatprep.mubr.msk.f32.mxu0 %vm126_vm0, %v2492_v41 }
  0x93   :  { %2121 = vmatprep.subr.bf16.mxu0 %v2120_v61 }
  0x95   :  { %1950 = vmatmul.mubr.msk.f32.gmra.mrb[22].mxu0 %vm126_vm0, %v105_v43 }
  0x96   :  { %1952 = vmatprep.mubr.msk.f32.mxu0 %vm126_vm0, %v106_v44  ;;  %2123 = vmatpush3.bf16.msra.mxu0 %v2120_v61 }
  0x97   :  { %2133 = vmatprep.subr.bf16.mxu0 %v2116_v56 }
  0x99   :  { %1953 = vmatmul.mubr.msk.f32.gmra.mrb[24].mxu0 %vm126_vm0, %v107_v45 }
  0x9a   :  { %1955 = vmatprep.mubr.msk.f32.mxu0 %vm126_vm0, %v108_v46 }
  0x9d   :  { %1956 = vmatmul.mubr.msk.f32.gmra.mrb[26].mxu0 %vm126_vm0, %v109_v49 }
  0x9e   :  { %1986 = vmatprep.mubr.msk.f32.mxu0 %vm126_vm0, %v2454_v6 }
  0xa1   :  { %1987 = vmatmul.mubr.msk.f32.vlgmr.msra.gmra.mrb[28].mxu0 %vm126_vm0, %v2458_v19 }
  0xa2   :  { %2135 = vmatpush3.bf16.msra.mxu0 %v2116_v56  ;;  %1989 = vmatprep.mubr.msk.f32.mxu0 %vm126_vm0, %v2460_v20 }
  0xa3   :  { %2137 = vmatprep.subr.bf16.mxu0 %v2120_v61 }
  0xa5   :  { %1990 = vmatmul.mubr.msk.f32.gmra.mrb[30].mxu0 %vm126_vm0, %v2470_v31 }
  0xa6   :  { %1992 = vmatprep.mubr.msk.f32.mxu0 %vm126_vm0, %v2472_v32  ;;  %2139 = vmatpush3.bf16.msra.mxu0 %v2120_v61 }
  0xa9   :  { %1993 = vmatmul.mubr.msk.f32.gmra.mrb[32].mxu0 %vm126_vm0, %v2481_v36 }
  0xaa   :  { %2020 = vmatprep.mubr.msk.f32.mxu0 %vm126_vm0, %v2483_v37 }
  0xad   :  { %2021 = vmatmul.mubr.msk.f32.vlgmr.msra.gmra.mrb[34].mxu0 %vm126_vm0, %v2490_v40 }
  0xae   :  { %2023 = vmatprep.mubr.msk.f32.mxu0 %vm126_vm0, %v2492_v41 }
  0xb1   :  { %2024 = vmatmul.mubr.msk.f32.gmra.mrb[36].mxu0 %vm126_vm0, %v105_v43 }
  0xb2   :  { %2026 = vmatprep.mubr.msk.f32.mxu0 %vm126_vm0, %v106_v44 }
  0xb5   :  { %2027 = vmatmul.mubr.msk.f32.gmra.mrb[38].mxu0 %vm126_vm0, %v107_v45 }
  0xb6   :  { %2029 = vmatprep.mubr.msk.f32.mxu0 %vm126_vm0, %v108_v46 }
  0xb9   :  { %2030 = vmatmul.mubr.msk.f32.gmra.mrb[40].mxu0 %vm126_vm0, %v109_v49 }
 0x13c   :  { %v1840_v3 = vpop.f32.mrb[0].mxu0 }
 0x13d   :  { %v211_v4 = vpop.f32.mrb[1].mxu0 }
 0x13e   :  { %1855 = vmatprep.mubr.msk.f32.mxu1 %vm126_vm0, %v211_v4 }
 0x13f   :  { %1856 = vmatmul.mubr.msk.f32.vlgmr.msra.gmra.mrb[0].mxu1 %vm126_vm0, %v1840_v3 }
 0x140   :  { %v1843_v6 = vpop.f32.mrb[2].mxu0  ;;  %2079 = vmatpush3.bf16.msra.mxu1 %v2549_v0 }
 0x141   :  { %v221_v7 = vpop.f32.mrb[3].mxu0  ;;  %2081 = vmatprep.subr.bf16.mxu1 %v2552_v5 }
 0x142   :  { %1858 = vmatprep.mubr.msk.f32.mxu1 %vm126_vm0, %v221_v7 }
 0x143   :  { %1859 = vmatmul.mubr.msk.f32.gmra.mrb[2].mxu1 %vm126_vm0, %v1843_v6 }
 0x144   :  { %v1846_v8 = vpop.f32.mrb[4].mxu0  ;;  %2083 = vmatpush3.bf16.msra.mxu1 %v2552_v5 }
 0x145   :  { %v231_v9 = vpop.f32.mrb[5].mxu0  ;;  %2093 = vmatprep.subr.bf16.mxu1 %v2462_v28 }
 0x146   :  { %1861 = vmatprep.mubr.msk.f32.mxu1 %vm126_vm0, %v231_v9 }
 0x147   :  { %1862 = vmatmul.mubr.msk.f32.gmra.mrb[4].mxu1 %vm126_vm0, %v1846_v8 }
 0x148   :  { %v1874_v10 = vpop.f32.mrb[6].mxu0 }
 0x149   :  { %v449_v11 = vpop.f32.mrb[7].mxu0 }
 0x14a   :  { %1892 = vmatprep.mubr.msk.f32.mxu1 %vm126_vm0, %v449_v11 }
 0x14b   :  { %1893 = vmatmul.mubr.msk.f32.vlgmr.msra.gmra.mrb[6].mxu1 %vm126_vm0, %v1874_v10 }
 0x14c   :  { %v1877_v12 = vpop.f32.mrb[8].mxu0  ;;  %2095 = vmatpush3.bf16.msra.mxu1 %v2462_v28 }
 0x14d   :  { %v459_v13 = vpop.f32.mrb[9].mxu0  ;;  %2097 = vmatprep.subr.bf16.mxu1 %v2466_v30 }
 0x14e   :  { %1895 = vmatprep.mubr.msk.f32.mxu1 %vm126_vm0, %v459_v13 }
 0x14f   :  { %1896 = vmatmul.mubr.msk.f32.gmra.mrb[8].mxu1 %vm126_vm0, %v1877_v12 }
 0x150   :  { %v1880_v14 = vpop.f32.mrb[10].mxu0  ;;  %2099 = vmatpush3.bf16.msra.mxu1 %v2466_v30 }
 0x151   :  { %v469_v15 = vpop.f32.mrb[11].mxu0  ;;  %2109 = vmatprep.subr.bf16.mxu1 %v2549_v0 }
 0x152   :  { %1898 = vmatprep.mubr.msk.f32.mxu1 %vm126_vm0, %v469_v15 }
 0x153   :  { %1899 = vmatmul.mubr.msk.f32.gmra.mrb[10].mxu1 %vm126_vm0, %v1880_v14 }
 0x154   :  { %v1883_v16 = vpop.f32.mrb[12].mxu0 }
 0x155   :  { %v479_v17 = vpop.f32.mrb[13].mxu0 }
 0x156   :  { %1901 = vmatprep.mubr.msk.f32.mxu1 %vm126_vm0, %v479_v17 }
 0x157   :  { %1902 = vmatmul.mubr.msk.f32.gmra.mrb[12].mxu1 %vm126_vm0, %v1883_v16 }
 0x158   :  { %v1914_v18 = vpop.f32.mrb[14].mxu0 }
 0x159   :  { %v704_v19 = vpop.f32.mrb[15].mxu0 }
 0x15a   :  { %1929 = vmatprep.mubr.msk.f32.mxu1 %vm126_vm0, %v704_v19 }
 0x15b   :  { %1930 = vmatmul.mubr.msk.f32.vlgmr.msra.gmra.mrb[14].mxu1 %vm126_vm0, %v1914_v18 }
 0x15c   :  { %v1917_v20 = vpop.f32.mrb[16].mxu0  ;;  %2111 = vmatpush3.bf16.msra.mxu1 %v2549_v0 }
 0x15d   :  { %v714_v21 = vpop.f32.mrb[17].mxu0  ;;  %2113 = vmatprep.subr.bf16.mxu1 %v2552_v5 }
 0x15e   :  { %1932 = vmatprep.mubr.msk.f32.mxu1 %vm126_vm0, %v714_v21 }
 0x15f   :  { %1933 = vmatmul.mubr.msk.f32.gmra.mrb[16].mxu1 %vm126_vm0, %v1917_v20 }
 0x160   :  { %v1920_v22 = vpop.f32.mrb[18].mxu0  ;;  %2115 = vmatpush3.bf16.msra.mxu1 %v2552_v5 }
 0x161   :  { %v724_v23 = vpop.f32.mrb[19].mxu0  ;;  %2125 = vmatprep.subr.bf16.mxu1 %v2462_v28 }
 0x162   :  { %1935 = vmatprep.mubr.msk.f32.mxu1 %vm126_vm0, %v724_v23 }
 0x163   :  { %1936 = vmatmul.mubr.msk.f32.gmra.mrb[18].mxu1 %vm126_vm0, %v1920_v22 }
 0x164   :  { %v1948_v24 = vpop.f32.mrb[20].mxu0 }
 0x165   :  { %v919_v25 = vpop.f32.mrb[21].mxu0 }
 0x166   :  { %1966 = vmatprep.mubr.msk.f32.mxu1 %vm126_vm0, %v919_v25 }
 0x167   :  { %1967 = vmatmul.mubr.msk.f32.vlgmr.msra.gmra.mrb[20].mxu1 %vm126_vm0, %v1948_v24 }
 0x168   :  { %v1951_v26 = vpop.f32.mrb[22].mxu0  ;;  %2127 = vmatpush3.bf16.msra.mxu1 %v2462_v28 }
 0x169   :  { %v929_v27 = vpop.f32.mrb[23].mxu0  ;;  %2129 = vmatprep.subr.bf16.mxu1 %v2466_v30 }
 0x16a   :  { %1969 = vmatprep.mubr.msk.f32.mxu1 %vm126_vm0, %v929_v27 }
 0x16b   :  { %1970 = vmatmul.mubr.msk.f32.gmra.mrb[22].mxu1 %vm126_vm0, %v1951_v26 }
 0x16c   :  { %v1954_v29 = vpop.f32.mrb[24].mxu0  ;;  %2131 = vmatpush3.bf16.msra.mxu1 %v2466_v30 }
 0x16d   :  { %v939_v31 = vpop.f32.mrb[25].mxu0  ;;  %2141 = vmatprep.subr.bf16.mxu1 %v2549_v0 }
 0x16e   :  { %1972 = vmatprep.mubr.msk.f32.mxu1 %vm126_vm0, %v939_v31 }
 0x16f   :  { %1973 = vmatmul.mubr.msk.f32.gmra.mrb[24].mxu1 %vm126_vm0, %v1954_v29 }
 0x170   :  { %v1957_v32 = vpop.f32.mrb[26].mxu0 }
 0x171   :  { %v949_v33 = vpop.f32.mrb[27].mxu0 }
 0x172   :  { %1975 = vmatprep.mubr.msk.f32.mxu1 %vm126_vm0, %v949_v33 }
 0x173   :  { %1976 = vmatmul.mubr.msk.f32.gmra.mrb[26].mxu1 %vm126_vm0, %v1957_v32 }
 0x174   :  { %v1988_v28 = vpop.f32.mrb[28].mxu0 }
 0x175   :  { %v1175_v34 = vpop.f32.mrb[29].mxu0 }
 0x176   :  { %2003 = vmatprep.mubr.msk.f32.mxu1 %vm126_vm0, %v1175_v34 }
 0x177   :  { %2004 = vmatmul.mubr.msk.f32.vlgmr.msra.gmra.mrb[28].mxu1 %vm126_vm0, %v1988_v28 }
 0x178   :  { %v1991_v30 = vpop.f32.mrb[30].mxu0  ;;  %2143 = vmatpush3.bf16.msra.mxu1 %v2549_v0 }
 0x179   :  { %v1185_v35 = vpop.f32.mrb[31].mxu0  ;;  %2145 = vmatprep.subr.bf16.mxu1 %v2552_v5 }
 0x17a   :  { %2006 = vmatprep.mubr.msk.f32.mxu1 %vm126_vm0, %v1185_v35 }
 0x17b   :  { %2007 = vmatmul.mubr.msk.f32.gmra.mrb[30].mxu1 %vm126_vm0, %v1991_v30 }
 0x17c   :  { %v1994_v36 = vpop.f32.mrb[32].mxu0  ;;  %2147 = vmatpush3.bf16.msra.mxu1 %v2552_v5 }
 0x17d   :  { %v1195_v37 = vpop.f32.mrb[33].mxu0 }
 0x17e   :  { %2009 = vmatprep.mubr.msk.f32.mxu1 %vm126_vm0, %v1195_v37 }
 0x17f   :  { %2010 = vmatmul.mubr.msk.f32.gmra.mrb[32].mxu1 %vm126_vm0, %v1994_v36 }
 0x180   :  { %v2022_v38 = vpop.f32.mrb[34].mxu0 }
 0x181   :  { %v1390_v39 = vpop.f32.mrb[35].mxu0 }
 0x182   :  { %2040 = vmatprep.mubr.msk.f32.mxu1 %vm126_vm0, %v1390_v39 }
 0x183   :  { %2041 = vmatmul.mubr.msk.f32.vlgmr.msra.gmra.mrb[34].mxu1 %vm126_vm0, %v2022_v38 }
 0x184   :  { %v2025_v40 = vpop.f32.mrb[36].mxu0 }
 0x185   :  { %v1400_v41 = vpop.f32.mrb[37].mxu0 }
 0x186   :  { %2043 = vmatprep.mubr.msk.f32.mxu1 %vm126_vm0, %v1400_v41 }
 0x187   :  { %2044 = vmatmul.mubr.msk.f32.gmra.mrb[36].mxu1 %vm126_vm0, %v2025_v40 }
 0x188   :  { %v2028_v42 = vpop.f32.mrb[38].mxu0 }
 0x189   :  { %v1410_v43 = vpop.f32.mrb[39].mxu0 }
 0x18a   :  { %2046 = vmatprep.mubr.msk.f32.mxu1 %vm126_vm0, %v1410_v43 }
 0x18b   :  { %2047 = vmatmul.mubr.msk.f32.gmra.mrb[38].mxu1 %vm126_vm0, %v2028_v42 }
 0x18c   :  { %v2031_v44 = vpop.f32.mrb[40].mxu0 }
 0x18d   :  { %v1420_v45 = vpop.f32.mrb[41].mxu0 }
 0x18e   :  { %2049 = vmatprep.mubr.msk.f32.mxu1 %vm126_vm0, %v1420_v45 }
 0x18f   :  { %2050 = vmatmul.mubr.msk.f32.gmra.mrb[40].mxu1 %vm126_vm0, %v2031_v44 }
 0x212   :  { %v1857_v46 = vpop.f32.mrb[0].mxu1 }
 0x213   :  { %354 = vst [vmem:[#allocation11 + $0x8] sm:$0xff] %v1857_v46  ;;  %v324_v47 = vpop.f32.mrb[1].mxu1 }
 0x214   :  { %353 = vst [vmem:[#allocation11] sm:$0xff] %v324_v47 }
 0x216   :  { %v1860_v48 = vpop.f32.mrb[2].mxu1 }
 0x217   :  { %356 = vst [vmem:[#allocation11 + $0x18] sm:$0xff] %v1860_v48  ;;  %v334_v49 = vpop.f32.mrb[3].mxu1 }
 0x218   :  { %355 = vst [vmem:[#allocation11 + $0x10] sm:$0xff] %v334_v49 }
 0x21a   :  { %v1863_v50 = vpop.f32.mrb[4].mxu1 }
 0x21b   :  { %358 = vst [vmem:[#allocation11 + $0x28] sm:$0xff] %v1863_v50  ;;  %v344_v51 = vpop.f32.mrb[5].mxu1 }
 0x21c   :  { %357 = vst [vmem:[#allocation11 + $0x20] sm:$0xff] %v344_v51 }
 0x21e   :  { %v1894_v52 = vpop.f32.mrb[6].mxu1 }
 0x21f   :  { %618 = vst [vmem:[#allocation12 + $0x8] sm:$0xff] %v1894_v52  ;;  %v578_v53 = vpop.f32.mrb[7].mxu1 }
 0x220   :  { %617 = vst [vmem:[#allocation12] sm:$0xff] %v578_v53 }
 0x222   :  { %v1897_v54 = vpop.f32.mrb[8].mxu1 }
 0x223   :  { %620 = vst [vmem:[#allocation12 + $0x18] sm:$0xff] %v1897_v54  ;;  %v588_v55 = vpop.f32.mrb[9].mxu1 }
 0x224   :  { %619 = vst [vmem:[#allocation12 + $0x10] sm:$0xff] %v588_v55 }
 0x226   :  { %v1900_v56 = vpop.f32.mrb[10].mxu1 }
 0x227   :  { %622 = vst [vmem:[#allocation12 + $0x28] sm:$0xff] %v1900_v56  ;;  %v598_v57 = vpop.f32.mrb[11].mxu1 }
 0x228   :  { %621 = vst [vmem:[#allocation12 + $0x20] sm:$0xff] %v598_v57 }
 0x22a   :  { %v1903_v58 = vpop.f32.mrb[12].mxu1 }
 0x22b   :  { %624 = vst [vmem:[#allocation12 + $0x38] sm:$0xff] %v1903_v58  ;;  %v608_v59 = vpop.f32.mrb[13].mxu1 }
 0x22c   :  { %623 = vst [vmem:[#allocation12 + $0x30] sm:$0xff] %v608_v59 }
 0x22e   :  { %v1931_v60 = vpop.f32.mrb[14].mxu1 }
 0x22f   :  { %848 = vst [vmem:[#allocation11 + $0x38] sm:$0xff] %v1931_v60  ;;  %v817_v61 = vpop.f32.mrb[15].mxu1 }
 0x230   :  { %847 = vst [vmem:[#allocation11 + $0x30] sm:$0xff] %v817_v61 }
 0x232   :  { %v1934_v62 = vpop.f32.mrb[16].mxu1 }
 0x233   :  { %850 = vst [vmem:[#allocation11 + $0x48] sm:$0xff] %v1934_v62  ;;  %v827_v63 = vpop.f32.mrb[17].mxu1 }
 0x234   :  { %849 = vst [vmem:[#allocation11 + $0x40] sm:$0xff] %v827_v63 }
 0x236   :  { %v1937_v0 = vpop.f32.mrb[18].mxu1 }
 0x237   :  { %852 = vst [vmem:[#allocation11 + $0x58] sm:$0xff] %v1937_v0  ;;  %v837_v1 = vpop.f32.mrb[19].mxu1 }
 0x238   :  { %851 = vst [vmem:[#allocation11 + $0x50] sm:$0xff] %v837_v1 }
 0x23a   :  { %v1968_v2 = vpop.f32.mrb[20].mxu1 }
 0x23b   :  { %1089 = vst [vmem:[#allocation12 + $0x48] sm:$0xff] %v1968_v2  ;;  %v1048_v3 = vpop.f32.mrb[21].mxu1 }
 0x23c   :  { %1088 = vst [vmem:[#allocation12 + $0x40] sm:$0xff] %v1048_v3 }
 0x23e   :  { %v1971_v4 = vpop.f32.mrb[22].mxu1 }
 0x23f   :  { %1091 = vst [vmem:[#allocation12 + $0x58] sm:$0xff] %v1971_v4  ;;  %v1058_v5 = vpop.f32.mrb[23].mxu1 }
 0x240   :  { %1090 = vst [vmem:[#allocation12 + $0x50] sm:$0xff] %v1058_v5 }
 0x242   :  { %v1974_v6 = vpop.f32.mrb[24].mxu1 }
 0x243   :  { %1093 = vst [vmem:[#allocation12 + $0x68] sm:$0xff] %v1974_v6  ;;  %v1068_v7 = vpop.f32.mrb[25].mxu1 }
 0x244   :  { %1092 = vst [vmem:[#allocation12 + $0x60] sm:$0xff] %v1068_v7 }
 0x246   :  { %v1977_v8 = vpop.f32.mrb[26].mxu1 }
 0x247   :  { %1095 = vst [vmem:[#allocation12 + $0x78] sm:$0xff] %v1977_v8  ;;  %v1078_v9 = vpop.f32.mrb[27].mxu1 }
 0x248   :  { %1094 = vst [vmem:[#allocation12 + $0x70] sm:$0xff] %v1078_v9 }
 0x24a   :  { %v2005_v10 = vpop.f32.mrb[28].mxu1 }
 0x24b   :  { %1319 = vst [vmem:[#allocation11 + $0x68] sm:$0xff] %v2005_v10  ;;  %v1288_v11 = vpop.f32.mrb[29].mxu1 }
 0x24c   :  { %1318 = vst [vmem:[#allocation11 + $0x60] sm:$0xff] %v1288_v11 }
 0x24e   :  { %v2008_v12 = vpop.f32.mrb[30].mxu1 }
 0x24f   :  { %1321 = vst [vmem:[#allocation11 + $0x78] sm:$0xff] %v2008_v12  ;;  %v1298_v13 = vpop.f32.mrb[31].mxu1 }
 0x250   :  { %1320 = vst [vmem:[#allocation11 + $0x70] sm:$0xff] %v1298_v13 }
 0x252   :  { %v2011_v14 = vpop.f32.mrb[32].mxu1 }
 0x253   :  { %1323 = vst [vmem:[#allocation11 + $0x88] sm:$0xff] %v2011_v14  ;;  %v1308_v15 = vpop.f32.mrb[33].mxu1 }
 0x254   :  { %1322 = vst [vmem:[#allocation11 + $0x80] sm:$0xff] %v1308_v15 }
 0x255   :  { %2278 = shalt.err (!%p2275_p2)
}
 0x256   :  { %s2279_s13 = scalar_lea.hbm %s2650_s5, 2304 }
 0x257   :  { %p2280_p3 = scmp.ne.s32.totalorder %s2650_s5, %s2279_s13  ;;  %p2283_p4 = scmp.lt.u32.totalorder %s2279_s13, %s2650_s5 }
 0x259   :  { %p2285_p5 = pnand %p2283_p4, %p2280_p3 }
 0x25b   :  { %2288 = shalt.err (!%p2285_p5)
}
 0x25c   :  { %1578 = dma.vmem_to_hbm [thread:$0]  %s1573_s11, 2304, %s2650_s5, [#allocation4], %s2323_s9, %s2323_s9, %s2324_s10   ;;  %v2042_v16 = vpop.f32.mrb[34].mxu1 }
 0x25d   :  { %1560 = vst [vmem:[#allocation12 + $0x88] sm:$0xff] %v2042_v16  ;;  %v1519_v17 = vpop.f32.mrb[35].mxu1  ;;  %s2329_s20 = smov [#allocation12]  }
 0x25e   :  { %1559 = vst [vmem:[#allocation12 + $0x80] sm:$0xff] %v1519_v17  ;;  %v2045_v18 = vpop.f32.mrb[36].mxu1  ;;  %s1584_s0 = sshll.u32 %s2329_s20, 4  ;;  %s1585_s0 = int_to_ptr.vmem [resolvable:$true] %s1584_s0 }
 0x25f   :  { %1562 = vst [vmem:[#allocation12 + $0x98] sm:$0xff] %v2045_v18  ;;  %v1529_v19 = vpop.f32.mrb[37].mxu1  ;;  %s2289_s5 = scalar_lea.vmem %s1585_s0, 3072  ;;  %p2294_p7 = scmp.lt.s32.totalorder %s1585_s0, %s1585_s0 }
 0x260   :  { %1561 = vst [vmem:[#allocation12 + $0x90] sm:$0xff] %v1529_v19  ;;  %v2048_v20 = vpop.f32.mrb[38].mxu1  ;;  %p2290_p6 = scmp.ne.s32.totalorder %s1585_s0, %s2289_s5  ;;  %p2295_p8 = scmp.lt.s32.totalorder %s2289_s5, %s2289_s5 }
 0x261   :  { %1564 = vst [vmem:[#allocation12 + $0xa8] sm:$0xff] %v2048_v20  ;;  %v1539_v21 = vpop.f32.mrb[39].mxu1 }
 0x262   :  { %1563 = vst [vmem:[#allocation12 + $0xa0] sm:$0xff] %v1539_v21  ;;  %v2051_v22 = vpop.f32.mrb[40].mxu1  ;;  %p2296_p9 = por %p2295_p8, %p2294_p7 }
 0x263   :  { %1566 = vst [vmem:[#allocation12 + $0xb8] sm:$0xff] %v2051_v22  ;;  %v1549_v23 = vpop.f32.mrb[41].mxu1 }
 0x264   :  { %1565 = vst [vmem:[#allocation12 + $0xb0] sm:$0xff] %v1549_v23  ;;  %p2297_p10 = pnand %p2296_p9, %p2290_p6 }
 0x266   :  { %2300 = shalt.err (!%p2297_p10)
}
 0x267   :  { %s2301_s22 = scalar_lea.hbm %s2651_s6, 3072 }
 0x268   :  { %p2302_p11 = scmp.ne.s32.totalorder %s2651_s6, %s2301_s22  ;;  %p2305_p12 = scmp.lt.u32.totalorder %s2301_s22, %s2651_s6 }
 0x26a   :  { %p2307_p13 = pnand %p2305_p12, %p2302_p11 }
 0x26c   :  { %2310 = shalt.err (!%p2307_p13)
}
 0x26d   :  { %1590 = dma.vmem_to_hbm [thread:$0]  %s1585_s0, 3072, %s2651_s6, [#allocation13], %s2323_s9, %s2323_s9, %s2324_s10  }
 0x26e   :  { %2317 = dma.done.wait [#allocation4], 2304  }
 0x26f   :  { %2318 = vsyncadd [#allocation4], 4294964992 }
 0x270   :  { %2319 = dma.done.wait [#allocation13], 3072  }
 0x271   :  { %2320 = vsyncadd [#allocation13], 4294964224 }
 0x272   :  { %1597 = vsyncpa [#allocation3], 1 }
 0x273   :  { %1598 = vsyncpa [#allocation6], 1 }
 0x274   :  { %1599 = vsyncpa [#allocation9], 1 }
 0x275   :  { %1600 = vsyncpa [#allocation4], 1 }
 0x276   :  { %1601 = vsyncpa [#allocation13], 1 }

</bundles_post_ra>
